<compile_context>
chip_gen: v7x
topology: tpu7x:2x2x1
jax: 0.10.0
libtpu: 0.0.40
codegen_flags: <defaults>
</compile_context>

<pallas_src>
import jax
import jax.numpy as jnp
from jax.experimental import pallas as pl
from jax.experimental.pallas import tpu as pltpu


def _round_up(x, m):
    return ((x + m - 1) // m) * m


def _pick_tile_m(din, dout_p, bytes_per_elem, vmem_budget=32 * 1024 * 1024):
    # Budget: 2 double-buffered tiles (x in, y out) + resident weight + bias.
    for tile in (2048, 1024, 512, 256, 128, 64, 32, 16, 8):
        need = (2 * tile * (din + dout_p) + din * dout_p + dout_p) * bytes_per_elem
        if need <= vmem_budget:
            return tile
    return 8


def linear_t_kernel(x_ref, w_ref, b_ref, o_ref):
    # x_ref : VMEM (TILE_M, Din)     pipelined tile of the flattened rows
    # w_ref : VMEM (Din, Dout_p)     resident (same block every grid step)
    # b_ref : VMEM (1, Dout_p)       effective bias = b + t * w_time, resident
    # o_ref : VMEM (TILE_M, Dout_p)  lane-dense output tile
    y = jnp.dot(x_ref[...], w_ref[...], preferred_element_type=jnp.float32)
    o_ref[...] = (y + b_ref[...]).astype(o_ref.dtype)


def linear_t_forward(t, x, w_x, w_t, b, tile_m_max=2048):
    """Time-augmented linear layer.

    t   : scalar time
    x   : (B, S, Din)
    w_x : (Din, Dout)  feature rows of the transposed (Din+1, Dout) weight
    w_t : (Dout,)      time row (row 0) of that weight
    b   : (Dout,)      bias
    returns (B, S, Dout) == concat([t*ones, x], -1) @ W + b
    """
    B, S, Din = x.shape
    Dout = w_x.shape[1]
    M = B * S
    dtype = x.dtype
    bpe = jnp.dtype(dtype).itemsize

    # Lane-dense output: pad the feature dim up to a multiple of 128.
    Dout_p = _round_up(Dout, 128)

    # Row tile: as big as the VMEM budget allows, capped by the problem size.
    tile_m = min(_pick_tile_m(Din, Dout_p, bpe), tile_m_max, _round_up(M, 8))
    tile_m = _round_up(tile_m, 8)
    M_p = _round_up(M, tile_m)
    grid_m = M_p // tile_m

    # Fold the time column into an effective bias (tiny (Dout,) wrapper op):
    #   concat([t*1, x]) @ W + b  ==  x @ W[1:] + (b + t * W[0])
    b_eff = (b + t * w_t).astype(dtype).reshape(1, Dout)

    x2d = x.reshape(M, Din)
    if M_p != M:
        x2d = jnp.pad(x2d, ((0, M_p - M), (0, 0)))
    w_p = w_x.astype(dtype)
    if Dout_p != Dout:
        w_p = jnp.pad(w_p, ((0, 0), (0, Dout_p - Dout)))
        b_eff = jnp.pad(b_eff, ((0, 0), (0, Dout_p - Dout)))

    out2d = pl.pallas_call(
        linear_t_kernel,
        out_shape=jax.ShapeDtypeStruct((M_p, Dout_p), dtype),
        grid_spec=pltpu.PrefetchScalarGridSpec(
            num_scalar_prefetch=0,
            grid=(grid_m,),
            in_specs=[
                pl.BlockSpec((tile_m, Din), lambda i: (i, 0)),   # x tile (pipelined)
                pl.BlockSpec((Din, Dout_p), lambda i: (0, 0)),   # weight (resident)
                pl.BlockSpec((1, Dout_p), lambda i: (0, 0)),     # effective bias
            ],
            out_specs=pl.BlockSpec((tile_m, Dout_p), lambda i: (i, 0)),
        ),
        compiler_params=pltpu.CompilerParams(
            # M rows are independent -> shard across v7x's 2 TensorCores
            # (no-op on single-TC v5e/v6e).
            dimension_semantics=("parallel",),
            vmem_limit_bytes=32 * 1024 * 1024,
        ),
    )(x2d, w_p, b_eff)

    return out2d[:M, :Dout].reshape(B, S, Dout)


def init_linear_t_params(key, dim_in, dim_out, dtype=jnp.float32):
    """nn.Linear(dim_in+1, dim_out) default init U(-k, k), k = 1/sqrt(fan_in),
    stored pre-split / pre-transposed in kernel-ready layout (done once)."""
    fan_in = dim_in + 1
    k = float(fan_in) ** -0.5
    kw, kb = jax.random.split(key)
    w_full = jax.random.uniform(kw, (fan_in, dim_out), dtype, minval=-k, maxval=k)
    b = jax.random.uniform(kb, (dim_out,), dtype, minval=-k, maxval=k)
    return w_full[1:, :], w_full[0, :], b     # (Din, Dout), (Dout,), (Dout,)


if __name__ == "__main__":
    B, S, dim_in, dim_out = 2, 8, 32, 32
    key = jax.random.PRNGKey(0)
    kx, kp = jax.random.split(key)

    x = jax.random.normal(kx, (B, S, dim_in), jnp.float32)
    t = jnp.float32(0.5)
    w_x, w_t, b = init_linear_t_params(kp, dim_in, dim_out)

    # Pure-JAX reference: exact concat-then-matmul torch semantics.
    w_full = jnp.concatenate([w_t[None, :], w_x], axis=0)     # (Din+1, Dout)
    tt = jnp.ones((B, S, 1), jnp.float32) * t
    ttx = jnp.concatenate([tt, x], axis=2)
    y_ref = jnp.einsum("bsk,kd->bsd", ttx, w_full) + b

    fwd = jax.jit(linear_t_forward, static_argnames=("tile_m_max",))

    # Single-tile path (tile covers all 16 rows).
    y = fwd(t, x, w_x, w_t, b)
    jax.block_until_ready(y)
    assert y.shape == (B, S, dim_out)
    assert jnp.allclose(y, y_ref, atol=1e-5, rtol=1e-5)

    # Multi-tile path: force tiny tiles so the pipelined grid (>1 step) is
    # exercised at these small demo shapes.
    y_tiled = fwd(t, x, w_x, w_t, b, tile_m_max=8)
    jax.block_until_ready(y_tiled)
    assert jnp.allclose(y_tiled, y_ref, atol=1e-5, rtol=1e-5)

    print("KERNEL_OK")
</pallas_src>

<mosaic_0001>
module attributes {stable_mosaic.version = 11 : i64} {
  func.func @linear_t_kernel(%arg0: i32, %arg1: memref<16x32xf32, #tpu.memory_space<vmem>>, %arg2: memref<32x128xf32, #tpu.memory_space<vmem>>, %arg3: memref<1x128xf32, #tpu.memory_space<vmem>>, %arg4: memref<16x128xf32, #tpu.memory_space<vmem>>) attributes {dimension_semantics = [#tpu.dimension_semantics<parallel>], iteration_bounds = array<i64: 1>, scalar_prefetch = 0 : i64, scratch_operands = 0 : i64, tpu.core_type = #tpu.core_type<tc>, window_params = [{transform_indices = @transform_0, window_bounds = array<i64: 16, 32>}, {pipeline_mode = #tpu.pipeline_mode<synchronous>, transform_indices = @transform_1, window_bounds = array<i64: 32, 128>}, {pipeline_mode = #tpu.pipeline_mode<synchronous>, transform_indices = @transform_2, window_bounds = array<i64: 1, 128>}, {transform_indices = @transform_3, window_bounds = array<i64: 16, 128>}]} {
    %c0 = arith.constant 0 : index
    %c0_0 = arith.constant 0 : index
    %0 = vector.load %arg1[%c0, %c0_0] : memref<16x32xf32, #tpu.memory_space<vmem>>, vector<16x32xf32>
    %c0_1 = arith.constant 0 : index
    %c0_2 = arith.constant 0 : index
    %1 = vector.load %arg2[%c0_1, %c0_2] : memref<32x128xf32, #tpu.memory_space<vmem>>, vector<32x128xf32>
    %cst = arith.constant dense<0.000000e+00> : vector<16x128xf32>
    %2 = tpu.matmul %0, %1, %cst {dimension_numbers = #tpu.dot_dimension_numbers<[1], [0], [0], [1], [0, 0, 1, 1], [], []>} : vector<16x32xf32>, vector<32x128xf32>, vector<16x128xf32> -> vector<16x128xf32>
    %c0_3 = arith.constant 0 : index
    %c0_4 = arith.constant 0 : index
    %3 = vector.load %arg3[%c0_3, %c0_4] : memref<1x128xf32, #tpu.memory_space<vmem>>, vector<1x128xf32>
    %4 = vector.broadcast %3 : vector<1x128xf32> to vector<16x128xf32>
    %5 = arith.addf %2, %4 : vector<16x128xf32>
    %c0_5 = arith.constant 0 : index
    %c0_6 = arith.constant 0 : index
    %6 = vector.load %arg4[%c0_5, %c0_6] : memref<16x128xf32, #tpu.memory_space<vmem>>, vector<16x128xf32>
    tpu.vector_store %arg4[%c0_5, %c0_6], %5 {strides = array<i32>} : memref<16x128xf32, #tpu.memory_space<vmem>>, vector<16x128xf32>,
    return
  }
  func.func @transform_0(%arg0: i32) -> (i32, i32) {
    %c0_i32 = arith.constant 0 : i32
    %c0_i32_0 = arith.constant 0 : i32
    return %arg0, %c0_i32 : i32, i32
  }
  func.func @transform_1(%arg0: i32) -> (i32, i32) {
    %c0_i32 = arith.constant 0 : i32
    %c0_i32_0 = arith.constant 0 : i32
    %c0_i32_1 = arith.constant 0 : i32
    return %c0_i32, %c0_i32_0 : i32, i32
  }
  func.func @transform_2(%arg0: i32) -> (i32, i32) {
    %c0_i32 = arith.constant 0 : i32
    %c0_i32_0 = arith.constant 0 : i32
    %c0_i32_1 = arith.constant 0 : i32
    return %c0_i32, %c0_i32_0 : i32, i32
  }
  func.func @transform_3(%arg0: i32) -> (i32, i32) {
    %c0_i32 = arith.constant 0 : i32
    %c0_i32_0 = arith.constant 0 : i32
    return %arg0, %c0_i32 : i32, i32
  }
}

</mosaic_0001>

<bundles_post_ra>
// kernel: linear_t_forward.1
= control target key start
LH: loop header
LB: loop body
LE: loop exit
PB: predicated region body
PF: predicated region fallthrough
CT: control target
= control target key end

     0   :  { %vm27_vm0 = vcmask 261120   ;;  %s190_s1 = inlined_call_operand.vmem [shape: f32[32,128], index: 1, kind: input, shape index: {}]   ;;  %s191_s0 = inlined_call_operand.vmem [shape: f32[16,32], index: 0, kind: input, shape index: {}]   ;;  %s192_s2 = inlined_call_operand.vmem [shape: f32[1,128], index: 2, kind: input, shape index: {}]   ;;  %s193_s3 = inlined_call_operand.vmem [shape: f32[16,128], index: 3, kind: output, shape index: {}]  }
   0x1   :  { %v16_v0 = vld [vmem:[%s190_s1] sm:$0xff]  ;;  %v17_v1 = vld [vmem:[%s190_s1 + $0x8] sm:$0xff]  ;;  %v18_v2 = vld [vmem:[%s190_s1 + $0x10] sm:$0xff] }
   0x2   :  { %v135_v3 = vpack.c.bf16 %v17_v1, %v16_v0  ;;  %v19_v4 = vld [vmem:[%s190_s1 + $0x18] sm:$0xff]  ;;  %v14_v5 = vld [vmem:[%s191_s0] sm:$0xff]  ;;  %v15_v7 = vld [vmem:[%s191_s0 + $0x8] sm:$0xff] }
   0x3   :  { %v139_v6 = vpack.c.bf16 %v19_v4, %v18_v2  ;;  %132 = vmatprep.mubr.msk.f32.mxu0 %vm27_vm0, %v14_v5  ;;  %v115_v8 = vld [vmem:[%s192_s2] ss:$0 sm:$0xff] }
   0x4   :  { %136 = vmatprep.subr.bf16.mxu0 %v135_v3 }
   0x5   :  { %138 = vmatpush3.bf16.msra.mxu0 %v135_v3 }
   0x6   :  { %140 = vmatprep.subr.bf16.mxu0 %v139_v6 }
   0x9   :  { %142 = vmatpush3.bf16.msra.mxu0 %v139_v6 }
   0xc   :  { %133 = vmatmul.mubr.msk.f32.vlgmr.msra.gmra.mrb[0].mxu0 %vm27_vm0, %v15_v7 }
  0xdf   :  { %v134_v9 = vpop.f32.mrb[0].mxu0 }
  0xe0   :  { %v106_v10 = vadd.f32 %v134_v9, %v115_v8  ;;  %v100_v11 = vpop.f32.mrb[1].mxu0 }
  0xe1   :  { %v101_v12 = vadd.f32 %v115_v8, %v100_v11 }
  0xe2   :  { %110 = vst [vmem:[%s193_s3 + $0x8] sm:$0xff] %v106_v10 }
  0xe3   :  { %109 = vst [vmem:[%s193_s3] sm:$0xff] %v101_v12 }

</bundles_post_ra>
